<compile_context>
chip_gen: v7x
topology: tpu7x:2x2x1
jax: 0.10.0
libtpu: 0.0.40
codegen_flags: <defaults>
</compile_context>

<pallas_src>
import math

import jax
import jax.numpy as jnp
from jax import lax
from jax.experimental import pallas as pl
from jax.experimental.pallas import tpu as pltpu


_INV_SQRT2 = 1.0 / math.sqrt(2.0)


def _gelu_exact(x):
    # PyTorch nn.GELU() default = exact erf formulation.
    return 0.5 * x * (1.0 + lax.erf(x * _INV_SQRT2))


def masker_kernel(x_ref, w1_ref, b1_ref, w2_ref, b2_ref, w3_ref, b3_ref, o_ref):
    # x tile in its native dtype (f32 or bf16); MXU accumulates in f32.
    x = x_ref[...]

    # Layer 1: (TN, D) @ (D, 64) + (1, 64) -> GELU
    h = jnp.dot(x, w1_ref[...], preferred_element_type=jnp.float32) + b1_ref[...]
    h = _gelu_exact(h)

    # Layer 2: (TN, 64) @ (64, 32) + (1, 32) -> GELU
    h = jnp.dot(h, w2_ref[...], preferred_element_type=jnp.float32) + b2_ref[...]
    h = _gelu_exact(h)

    # Layer 3 (32 -> 1) as w3_row @ h^T (A @ B^T dot_general), so the result is a
    # lane-dense (1, TN) row instead of a (TN, 1) column of masked stores.
    y = lax.dot_general(w3_ref[...], h, (((1,), (1,)), ((), ())),
                        preferred_element_type=jnp.float32) + b3_ref[...]

    o_ref[...] = jax.nn.sigmoid(y).astype(o_ref.dtype).reshape(o_ref.shape)


def _round_up(x, m):
    return ((x + m - 1) // m) * m


def _vmem_budget():
    """Returns (vmem_limit_bytes, x_stream_budget_bytes, min_grid_steps)."""
    phys = None
    try:
        phys = int(getattr(pltpu.get_tpu_info(), "vmem_capacity_bytes", 0)) or None
    except Exception:
        phys = None
    if phys is None or phys <= (64 << 20):
        # v7x-class (64 MiB / TensorCore) or unknown: conservative budget and
        # keep >= 4 grid steps so "parallel" can shard over the 2 TensorCores.
        return 44 << 20, 28 << 20, 4
    # v5e / v6e: 128 MiB physical VMEM, single TensorCore -> go big.
    return 80 << 20, 56 << 20, 1


def _pick_tile_n(n, d, itemsize, *, x_budget_bytes, max_tile=4096, min_grid_steps=1):
    """Row-tile size: large enough (multi-MiB) to hit the HBM roofline, small
    enough that the double-buffered x tile + f32 intermediates fit the VMEM
    budget.  Budgets with the lane-padded row width (ceil(D/128)*128)."""
    sub = 16 if itemsize < 4 else 8           # sublane granularity (bf16 packs 2x)
    dp = _round_up(max(d, 1), 128)            # lane-padded row width
    # per-row VMEM: double-buffered x row + ~4 live (row, 128-lane) f32
    # intermediates (GELU chain) + double-buffered output element.
    per_row = 2 * dp * itemsize + 4 * 128 * 4 + 2 * itemsize
    cap = max(sub, x_budget_bytes // per_row)
    tile = min(max_tile, cap, _round_up(n, sub))
    if min_grid_steps > 1:
        tile = min(tile, _round_up(pl.cdiv(n, min_grid_steps), sub))
    quantum = 128 if tile >= 128 else sub     # lane-dense output store when possible
    tile = max(sub, (tile // quantum) * quantum)
    return int(tile)


def init_masker_params(key, input_dim, dtype=jnp.float32):
    """Deterministic init matching the PyTorch module's parameter shapes.

    nn.Linear(in, out) -> weight (out, in), bias (out,).  We store transposed
    weights (in, out) so the kernel can do x @ W directly.
    """
    dims = [(input_dim, 64), (64, 32), (32, 1)]
    keys = jax.random.split(key, 2 * len(dims))
    params = []
    for li, (din, dout) in enumerate(dims):
        bound = 1.0 / math.sqrt(din)  # PyTorch default uniform init bound
        w = jax.random.uniform(keys[2 * li], (din, dout), dtype, -bound, bound)
        b = jax.random.uniform(keys[2 * li + 1], (1, dout), dtype, -bound, bound)
        params.append((w, b))
    return params


def masker_forward(x, params, *, tile_n=None):
    """x: (B, S, D) -> (B, S, 1), same semantics as Masker.forward."""
    (w1, b1), (w2, b2), (w3, b3) = params
    B, S, D = x.shape
    N = B * S
    x2 = x.reshape(N, D)

    f32 = jnp.float32
    b1r = b1.reshape(1, 64).astype(f32)
    w2f = w2.astype(f32)
    b2r = b2.reshape(1, 32).astype(f32)
    w3r = w3.reshape(1, 32).astype(f32)   # (32, 1) column -> (1, 32) row
    b3r = b3.reshape(1, 1).astype(f32)

    itemsize = x.dtype.itemsize
    vmem_limit, x_budget, min_steps = _vmem_budget()
    tn = tile_n if tile_n is not None else _pick_tile_n(
        N, D, itemsize, x_budget_bytes=x_budget, min_grid_steps=min_steps)
    num_tiles = int(pl.cdiv(N, tn))

    weight_bytes = sum(int(a.size) * a.dtype.itemsize
                       for a in (w1, b1r, w2f, b2r, w3r, b3r))
    cost = pl.CostEstimate(
        flops=2 * N * (D * 64 + 64 * 32 + 32),
        transcendentals=N * (64 + 32 + 1),  # erf (layers 1, 2) + sigmoid
        bytes_accessed=N * D * itemsize + weight_bytes + N * itemsize,
    )

    def _call(single_buffer_weights):
        wkw = ({"pipeline_mode": pl.Buffered(1)} if single_buffer_weights else {})
        in_specs = [
            pl.BlockSpec((tn, D), lambda i: (i, 0)),              # x: streamed tiles
            pl.BlockSpec((D, 64), lambda i: (0, 0), **wkw),       # VMEM-resident weights
            pl.BlockSpec((1, 64), lambda i: (0, 0), **wkw),
            pl.BlockSpec((64, 32), lambda i: (0, 0), **wkw),
            pl.BlockSpec((1, 32), lambda i: (0, 0), **wkw),
            pl.BlockSpec((1, 32), lambda i: (0, 0), **wkw),       # w3 as (1, 32) row
            pl.BlockSpec((1, 1), lambda i: (0, 0), **wkw),
        ]
        return pl.pallas_call(
            masker_kernel,
            out_shape=jax.ShapeDtypeStruct((num_tiles, 1, tn), x.dtype),
            grid=(num_tiles,),
            in_specs=in_specs,
            out_specs=pl.BlockSpec((1, 1, tn), lambda i: (i, 0, 0)),  # lane-dense row
            compiler_params=pltpu.CompilerParams(
                dimension_semantics=("parallel",),    # shard row tiles over TCs
                vmem_limit_bytes=vmem_limit,
            ),
            cost_estimate=cost,
        )(x2, w1, b1r, w2f, b2r, w3r, b3r)

    try:
        out = _call(True)
    except Exception:
        # TODO(synk): fall back to default double-buffered weights if this
        # runtime rejects pl.Buffered(1); costs only a little extra VMEM.
        out = _call(False)

    out = out.reshape(num_tiles * tn)
    if num_tiles * tn != N:
        out = out[:N]          # drop the tail-block garbage rows
    return out.reshape(B, S, 1)


def masker_reference(x, params):
    (w1, b1), (w2, b2), (w3, b3) = params
    xf = x.astype(jnp.float32)
    h = _gelu_exact(xf @ w1.astype(jnp.float32) + b1.astype(jnp.float32))
    h = _gelu_exact(h @ w2.astype(jnp.float32) + b2.astype(jnp.float32))
    return jax.nn.sigmoid(h @ w3.astype(jnp.float32) + b3.astype(jnp.float32))


if __name__ == "__main__":
    key = jax.random.PRNGKey(0)
    k_params, k_x = jax.random.split(key)

    B, S, D = 2, 8, 32  # input_dim = 32
    params = init_masker_params(k_params, D)
    x = jax.random.normal(k_x, (B, S, D), jnp.float32)
    ref = masker_reference(x, params)

    # f32 path
    out = jax.block_until_ready(masker_forward(x, params))
    assert out.shape == (B, S, 1), out.shape
    assert jnp.allclose(out, ref, atol=1e-4, rtol=1e-4), "f32 mismatch vs reference"

    # bf16 x path (halves the HBM stream feeding layer 1); looser tolerance.
    x_bf16 = x.astype(jnp.bfloat16)
    params_bf16 = [((w.astype(jnp.bfloat16) if li == 0 else w), b)
                   for li, (w, b) in enumerate(params)]
    out_bf = jax.block_until_ready(masker_forward(x_bf16, params_bf16))
    assert out_bf.shape == (B, S, 1), out_bf.shape
    assert jnp.allclose(out_bf.astype(jnp.float32), ref, atol=2e-2, rtol=2e-2), \
        "bf16 mismatch vs reference"

    print("KERNEL_OK")
</pallas_src>

<mosaic_0001>
module attributes {stable_mosaic.version = 11 : i64} {
  func.func @masker_kernel(%arg0: i32, %arg1: memref<8x32xf32, #tpu.memory_space<vmem>>, %arg2: memref<32x64xf32, #tpu.memory_space<vmem>>, %arg3: memref<1x64xf32, #tpu.memory_space<vmem>>, %arg4: memref<64x32xf32, #tpu.memory_space<vmem>>, %arg5: memref<1x32xf32, #tpu.memory_space<vmem>>, %arg6: memref<1x32xf32, #tpu.memory_space<vmem>>, %arg7: memref<1x1xf32, #tpu.memory_space<vmem>>, %arg8: memref<1x1x8xf32, #tpu.memory_space<vmem>>) attributes {dimension_semantics = [#tpu.dimension_semantics<parallel>], iteration_bounds = array<i64: 2>, scalar_prefetch = 0 : i64, scratch_operands = 0 : i64, tpu.core_type = #tpu.core_type<tc>, window_params = [{transform_indices = @transform_0, window_bounds = array<i64: 8, 32>}, {pipeline_mode = #tpu.pipeline_mode<synchronous>, transform_indices = @transform_1, window_bounds = array<i64: 32, 64>}, {pipeline_mode = #tpu.pipeline_mode<synchronous>, transform_indices = @transform_2, window_bounds = array<i64: 1, 64>}, {pipeline_mode = #tpu.pipeline_mode<synchronous>, transform_indices = @transform_3, window_bounds = array<i64: 64, 32>}, {pipeline_mode = #tpu.pipeline_mode<synchronous>, transform_indices = @transform_4, window_bounds = array<i64: 1, 32>}, {pipeline_mode = #tpu.pipeline_mode<synchronous>, transform_indices = @transform_5, window_bounds = array<i64: 1, 32>}, {pipeline_mode = #tpu.pipeline_mode<synchronous>, transform_indices = @transform_6, window_bounds = array<i64: 1, 1>}, {transform_indices = @transform_7, window_bounds = array<i64: 1, 1, 8>}]} {
    %c0 = arith.constant 0 : index
    %c0_0 = arith.constant 0 : index
    %0 = vector.load %arg1[%c0, %c0_0] : memref<8x32xf32, #tpu.memory_space<vmem>>, vector<8x32xf32>
    %c0_1 = arith.constant 0 : index
    %c0_2 = arith.constant 0 : index
    %1 = vector.load %arg2[%c0_1, %c0_2] : memref<32x64xf32, #tpu.memory_space<vmem>>, vector<32x64xf32>
    %cst = arith.constant dense<0.000000e+00> : vector<8x64xf32>
    %2 = tpu.matmul %0, %1, %cst {dimension_numbers = #tpu.dot_dimension_numbers<[1], [0], [0], [1], [0, 0, 1, 1], [], []>} : vector<8x32xf32>, vector<32x64xf32>, vector<8x64xf32> -> vector<8x64xf32>
    %c0_3 = arith.constant 0 : index
    %c0_4 = arith.constant 0 : index
    %3 = vector.load %arg3[%c0_3, %c0_4] : memref<1x64xf32, #tpu.memory_space<vmem>>, vector<1x64xf32>
    %4 = vector.broadcast %3 : vector<1x64xf32> to vector<8x64xf32>
    %5 = arith.addf %2, %4 : vector<8x64xf32>
    %cst_5 = arith.constant 5.000000e-01 : f32
    %6 = vector.broadcast %cst_5 : f32 to vector<8x64xf32>
    %7 = arith.mulf %6, %5 : vector<8x64xf32>
    %cst_6 = arith.constant 0.707106769 : f32
    %8 = vector.broadcast %cst_6 : f32 to vector<8x64xf32>
    %9 = arith.mulf %5, %8 : vector<8x64xf32>
    %10 = math.erf %9 : vector<8x64xf32>
    %cst_7 = arith.constant 1.000000e+00 : f32
    %11 = vector.broadcast %cst_7 : f32 to vector<8x64xf32>
    %12 = arith.addf %11, %10 : vector<8x64xf32>
    %13 = arith.mulf %7, %12 : vector<8x64xf32>
    %c0_8 = arith.constant 0 : index
    %c0_9 = arith.constant 0 : index
    %14 = vector.load %arg4[%c0_8, %c0_9] : memref<64x32xf32, #tpu.memory_space<vmem>>, vector<64x32xf32>
    %cst_10 = arith.constant dense<0.000000e+00> : vector<8x32xf32>
    %15 = tpu.matmul %13, %14, %cst_10 {dimension_numbers = #tpu.dot_dimension_numbers<[1], [0], [0], [1], [0, 0, 1, 1], [], []>} : vector<8x64xf32>, vector<64x32xf32>, vector<8x32xf32> -> vector<8x32xf32>
    %c0_11 = arith.constant 0 : index
    %c0_12 = arith.constant 0 : index
    %16 = vector.load %arg5[%c0_11, %c0_12] : memref<1x32xf32, #tpu.memory_space<vmem>>, vector<1x32xf32>
    %17 = vector.broadcast %16 : vector<1x32xf32> to vector<8x32xf32>
    %18 = arith.addf %15, %17 : vector<8x32xf32>
    %cst_13 = arith.constant 5.000000e-01 : f32
    %19 = vector.broadcast %cst_13 : f32 to vector<8x32xf32>
    %20 = arith.mulf %19, %18 : vector<8x32xf32>
    %cst_14 = arith.constant 0.707106769 : f32
    %21 = vector.broadcast %cst_14 : f32 to vector<8x32xf32>
    %22 = arith.mulf %18, %21 : vector<8x32xf32>
    %23 = math.erf %22 : vector<8x32xf32>
    %cst_15 = arith.constant 1.000000e+00 : f32
    %24 = vector.broadcast %cst_15 : f32 to vector<8x32xf32>
    %25 = arith.addf %24, %23 : vector<8x32xf32>
    %26 = arith.mulf %20, %25 : vector<8x32xf32>
    %c0_16 = arith.constant 0 : index
    %c0_17 = arith.constant 0 : index
    %27 = vector.load %arg6[%c0_16, %c0_17] : memref<1x32xf32, #tpu.memory_space<vmem>>, vector<1x32xf32>
    %cst_18 = arith.constant dense<0.000000e+00> : vector<1x8xf32>
    %28 = tpu.matmul %27, %26, %cst_18 {dimension_numbers = #tpu.dot_dimension_numbers<[1], [1], [0], [0], [0, 0, 1, 0], [], []>} : vector<1x32xf32>, vector<8x32xf32>, vector<1x8xf32> -> vector<1x8xf32>
    %c0_19 = arith.constant 0 : index
    %c0_20 = arith.constant 0 : index
    %29 = vector.load %arg7[%c0_19, %c0_20] : memref<1x1xf32, #tpu.memory_space<vmem>>, vector<1x1xf32>
    %30 = vector.broadcast %29 : vector<1x1xf32> to vector<1x8xf32>
    %31 = arith.addf %28, %30 : vector<1x8xf32>
    %32 = arith.negf %31 : vector<1x8xf32>
    %33 = math.exp %32 : vector<1x8xf32>
    %cst_21 = arith.constant 1.000000e+00 : f32
    %34 = vector.broadcast %cst_21 : f32 to vector<1x8xf32>
    %35 = arith.addf %34, %33 : vector<1x8xf32>
    %36 = arith.divf %34, %35 : vector<1x8xf32>
    %37 = vector.shape_cast %36 : vector<1x8xf32> to vector<1x1x8xf32>
    %c0_22 = arith.constant 0 : index
    %c0_23 = arith.constant 0 : index
    %c0_24 = arith.constant 0 : index
    %38 = vector.load %arg8[%c0_22, %c0_23, %c0_24] : memref<1x1x8xf32, #tpu.memory_space<vmem>>, vector<1x1x8xf32>
    tpu.vector_store %arg8[%c0_22, %c0_23, %c0_24], %37 {strides = array<i32>} : memref<1x1x8xf32, #tpu.memory_space<vmem>>, vector<1x1x8xf32>,
    return
  }
  func.func @transform_0(%arg0: i32) -> (i32, i32) {
    %c0_i32 = arith.constant 0 : i32
    %c0_i32_0 = arith.constant 0 : i32
    return %arg0, %c0_i32 : i32, i32
  }
  func.func @transform_1(%arg0: i32) -> (i32, i32) {
    %c0_i32 = arith.constant 0 : i32
    %c0_i32_0 = arith.constant 0 : i32
    %c0_i32_1 = arith.constant 0 : i32
    return %c0_i32, %c0_i32_0 : i32, i32
  }
  func.func @transform_2(%arg0: i32) -> (i32, i32) {
    %c0_i32 = arith.constant 0 : i32
    %c0_i32_0 = arith.constant 0 : i32
    %c0_i32_1 = arith.constant 0 : i32
    return %c0_i32, %c0_i32_0 : i32, i32
  }
  func.func @transform_3(%arg0: i32) -> (i32, i32) {
    %c0_i32 = arith.constant 0 : i32
    %c0_i32_0 = arith.constant 0 : i32
    %c0_i32_1 = arith.constant 0 : i32
    return %c0_i32, %c0_i32_0 : i32, i32
  }
  func.func @transform_4(%arg0: i32) -> (i32, i32) {
    %c0_i32 = arith.constant 0 : i32
    %c0_i32_0 = arith.constant 0 : i32
    %c0_i32_1 = arith.constant 0 : i32
    return %c0_i32, %c0_i32_0 : i32, i32
  }
  func.func @transform_5(%arg0: i32) -> (i32, i32) {
    %c0_i32 = arith.constant 0 : i32
    %c0_i32_0 = arith.constant 0 : i32
    %c0_i32_1 = arith.constant 0 : i32
    return %c0_i32, %c0_i32_0 : i32, i32
  }
  func.func @transform_6(%arg0: i32) -> (i32, i32) {
    %c0_i32 = arith.constant 0 : i32
    %c0_i32_0 = arith.constant 0 : i32
    %c0_i32_1 = arith.constant 0 : i32
    return %c0_i32, %c0_i32_0 : i32, i32
  }
  func.func @transform_7(%arg0: i32) -> (i32, i32, i32) {
    %c0_i32 = arith.constant 0 : i32
    %c0_i32_0 = arith.constant 0 : i32
    %c0_i32_1 = arith.constant 0 : i32
    return %arg0, %c0_i32, %c0_i32_0 : i32, i32, i32
  }
}

module attributes {stable_mosaic.version = 11 : i64} {
  func.func @masker_kernel(%arg0: i32, %arg1: memref<8x32xf32, #tpu.memory_space<vmem>>, %arg2: memref<32x64xf32, #tpu.memory_space<vmem>>, %arg3: memref<1x64xf32, #tpu.memory_space<vmem>>, %arg4: memref<64x32xf32, #tpu.memory_space<vmem>>, %arg5: memref<1x32xf32, #tpu.memory_space<vmem>>, %arg6: memref<1x32xf32, #tpu.memory_space<vmem>>, %arg7: memref<1x1xf32, #tpu.memory_space<vmem>>, %arg8: memref<1x1x8xf32, #tpu.memory_space<vmem>>) attributes {dimension_semantics = [#tpu.dimension_semantics<parallel>], iteration_bounds = array<i64: 2>, scalar_prefetch = 0 : i64, scratch_operands = 0 : i64, tpu.core_type = #tpu.core_type<tc>, window_params = [{transform_indices = @transform_0, window_bounds = array<i64: 8, 32>}, {pipeline_mode = #tpu.pipeline_mode<synchronous>, transform_indices = @transform_1, window_bounds = array<i64: 32, 64>}, {pipeline_mode = #tpu.pipeline_mode<synchronous>, transform_indices = @transform_2, window_bounds = array<i64: 1, 64>}, {pipeline_mode = #tpu.pipeline_mode<synchronous>, transform_indices = @transform_3, window_bounds = array<i64: 64, 32>}, {pipeline_mode = #tpu.pipeline_mode<synchronous>, transform_indices = @transform_4, window_bounds = array<i64: 1, 32>}, {pipeline_mode = #tpu.pipeline_mode<synchronous>, transform_indices = @transform_5, window_bounds = array<i64: 1, 32>}, {pipeline_mode = #tpu.pipeline_mode<synchronous>, transform_indices = @transform_6, window_bounds = array<i64: 1, 1>}, {transform_indices = @transform_7, window_bounds = array<i64: 1, 1, 8>}]} {
    %c0 = arith.constant 0 : index
    %c0_0 = arith.constant 0 : index
    %0 = vector.load %arg1[%c0, %c0_0] : memref<8x32xf32, #tpu.memory_space<vmem>>, vector<8x32xf32>
    %c0_1 = arith.constant 0 : index
    %c0_2 = arith.constant 0 : index
    %1 = vector.load %arg2[%c0_1, %c0_2] : memref<32x64xf32, #tpu.memory_space<vmem>>, vector<32x64xf32>
    %cst = arith.constant dense<0.000000e+00> : vector<8x64xf32>
    %2 = tpu.matmul %0, %1, %cst {dimension_numbers = #tpu.dot_dimension_numbers<[1], [0], [0], [1], [0, 0, 1, 1], [], []>} : vector<8x32xf32>, vector<32x64xf32>, vector<8x64xf32> -> vector<8x64xf32>
    %c0_3 = arith.constant 0 : index
    %c0_4 = arith.constant 0 : index
    %3 = vector.load %arg3[%c0_3, %c0_4] : memref<1x64xf32, #tpu.memory_space<vmem>>, vector<1x64xf32>
    %4 = vector.broadcast %3 : vector<1x64xf32> to vector<8x64xf32>
    %5 = arith.addf %2, %4 : vector<8x64xf32>
    %cst_5 = arith.constant 5.000000e-01 : f32
    %6 = vector.broadcast %cst_5 : f32 to vector<8x64xf32>
    %7 = arith.mulf %6, %5 : vector<8x64xf32>
    %cst_6 = arith.constant 0.707106769 : f32
    %8 = vector.broadcast %cst_6 : f32 to vector<8x64xf32>
    %9 = arith.mulf %5, %8 : vector<8x64xf32>
    %10 = math.erf %9 : vector<8x64xf32>
    %cst_7 = arith.constant 1.000000e+00 : f32
    %11 = vector.broadcast %cst_7 : f32 to vector<8x64xf32>
    %12 = arith.addf %11, %10 : vector<8x64xf32>
    %13 = arith.mulf %7, %12 : vector<8x64xf32>
    %c0_8 = arith.constant 0 : index
    %c0_9 = arith.constant 0 : index
    %14 = vector.load %arg4[%c0_8, %c0_9] : memref<64x32xf32, #tpu.memory_space<vmem>>, vector<64x32xf32>
    %cst_10 = arith.constant dense<0.000000e+00> : vector<8x32xf32>
    %15 = tpu.matmul %13, %14, %cst_10 {dimension_numbers = #tpu.dot_dimension_numbers<[1], [0], [0], [1], [0, 0, 1, 1], [], []>} : vector<8x64xf32>, vector<64x32xf32>, vector<8x32xf32> -> vector<8x32xf32>
    %c0_11 = arith.constant 0 : index
    %c0_12 = arith.constant 0 : index
    %16 = vector.load %arg5[%c0_11, %c0_12] : memref<1x32xf32, #tpu.memory_space<vmem>>, vector<1x32xf32>
    %17 = vector.broadcast %16 : vector<1x32xf32> to vector<8x32xf32>
    %18 = arith.addf %15, %17 : vector<8x32xf32>
    %cst_13 = arith.constant 5.000000e-01 : f32
    %19 = vector.broadcast %cst_13 : f32 to vector<8x32xf32>
    %20 = arith.mulf %19, %18 : vector<8x32xf32>
    %cst_14 = arith.constant 0.707106769 : f32
    %21 = vector.broadcast %cst_14 : f32 to vector<8x32xf32>
    %22 = arith.mulf %18, %21 : vector<8x32xf32>
    %23 = math.erf %22 : vector<8x32xf32>
    %cst_15 = arith.constant 1.000000e+00 : f32
    %24 = vector.broadcast %cst_15 : f32 to vector<8x32xf32>
    %25 = arith.addf %24, %23 : vector<8x32xf32>
    %26 = arith.mulf %20, %25 : vector<8x32xf32>
    %c0_16 = arith.constant 0 : index
    %c0_17 = arith.constant 0 : index
    %27 = vector.load %arg6[%c0_16, %c0_17] : memref<1x32xf32, #tpu.memory_space<vmem>>, vector<1x32xf32>
    %cst_18 = arith.constant dense<0.000000e+00> : vector<1x8xf32>
    %28 = tpu.matmul %27, %26, %cst_18 {dimension_numbers = #tpu.dot_dimension_numbers<[1], [1], [0], [0], [0, 0, 1, 0], [], []>} : vector<1x32xf32>, vector<8x32xf32>, vector<1x8xf32> -> vector<1x8xf32>
    %c0_19 = arith.constant 0 : index
    %c0_20 = arith.constant 0 : index
    %29 = vector.load %arg7[%c0_19, %c0_20] : memref<1x1xf32, #tpu.memory_space<vmem>>, vector<1x1xf32>
    %30 = vector.broadcast %29 : vector<1x1xf32> to vector<1x8xf32>
    %31 = arith.addf %28, %30 : vector<1x8xf32>
    %32 = arith.negf %31 : vector<1x8xf32>
    %33 = math.exp %32 : vector<1x8xf32>
    %cst_21 = arith.constant 1.000000e+00 : f32
    %34 = vector.broadcast %cst_21 : f32 to vector<1x8xf32>
    %35 = arith.addf %34, %33 : vector<1x8xf32>
    %36 = arith.divf %34, %35 : vector<1x8xf32>
    %37 = vector.shape_cast %36 : vector<1x8xf32> to vector<1x1x8xf32>
    %c0_22 = arith.constant 0 : index
    %c0_23 = arith.constant 0 : index
    %c0_24 = arith.constant 0 : index
    %38 = vector.load %arg8[%c0_22, %c0_23, %c0_24] : memref<1x1x8xf32, #tpu.memory_space<vmem>>, vector<1x1x8xf32>
    tpu.vector_store %arg8[%c0_22, %c0_23, %c0_24], %37 {strides = array<i32>} : memref<1x1x8xf32, #tpu.memory_space<vmem>>, vector<1x1x8xf32>,
    return
  }
  func.func @transform_0(%arg0: i32) -> (i32, i32) {
    %c0_i32 = arith.constant 0 : i32
    %c0_i32_0 = arith.constant 0 : i32
    return %arg0, %c0_i32 : i32, i32
  }
  func.func @transform_1(%arg0: i32) -> (i32, i32) {
    %c0_i32 = arith.constant 0 : i32
    %c0_i32_0 = arith.constant 0 : i32
    %c0_i32_1 = arith.constant 0 : i32
    return %c0_i32, %c0_i32_0 : i32, i32
  }
  func.func @transform_2(%arg0: i32) -> (i32, i32) {
    %c0_i32 = arith.constant 0 : i32
    %c0_i32_0 = arith.constant 0 : i32
    %c0_i32_1 = arith.constant 0 : i32
    return %c0_i32, %c0_i32_0 : i32, i32
  }
  func.func @transform_3(%arg0: i32) -> (i32, i32) {
    %c0_i32 = arith.constant 0 : i32
    %c0_i32_0 = arith.constant 0 : i32
    %c0_i32_1 = arith.constant 0 : i32
    return %c0_i32, %c0_i32_0 : i32, i32
  }
  func.func @transform_4(%arg0: i32) -> (i32, i32) {
    %c0_i32 = arith.constant 0 : i32
    %c0_i32_0 = arith.constant 0 : i32
    %c0_i32_1 = arith.constant 0 : i32
    return %c0_i32, %c0_i32_0 : i32, i32
  }
  func.func @transform_5(%arg0: i32) -> (i32, i32) {
    %c0_i32 = arith.constant 0 : i32
    %c0_i32_0 = arith.constant 0 : i32
    %c0_i32_1 = arith.constant 0 : i32
    return %c0_i32, %c0_i32_0 : i32, i32
  }
  func.func @transform_6(%arg0: i32) -> (i32, i32) {
    %c0_i32 = arith.constant 0 : i32
    %c0_i32_0 = arith.constant 0 : i32
    %c0_i32_1 = arith.constant 0 : i32
    return %c0_i32, %c0_i32_0 : i32, i32
  }
  func.func @transform_7(%arg0: i32) -> (i32, i32, i32) {
    %c0_i32 = arith.constant 0 : i32
    %c0_i32_0 = arith.constant 0 : i32
    %c0_i32_1 = arith.constant 0 : i32
    return %arg0, %c0_i32, %c0_i32_0 : i32, i32, i32
  }
}

</mosaic_0001>

<bundles_post_ra>
// kernel: tpu_custom_call.1
= control target key start
LH: loop header
LB: loop body
LE: loop exit
PB: predicated region body
PF: predicated region fallthrough
CT: control target
= control target key end

     0   :  { %s1022_s0 = inlined_call_operand.vmem [shape: f32[16,32], index: 0, kind: input, shape index: {}]   ;;  %s1023_s1 = inlined_call_operand.vmem [shape: f32[32,64], index: 1, kind: input, shape index: {}]   ;;  %s1024_s2 = inlined_call_operand.vmem [shape: f32[1,64], index: 2, kind: input, shape index: {}]   ;;  %s1025_s3 = inlined_call_operand.vmem [shape: f32[64,32], index: 3, kind: input, shape index: {}]   ;;  %s1026_s4 = inlined_call_operand.vmem [shape: f32[1,32], index: 4, kind: input, shape index: {}]   ;;  %s1027_s5 = inlined_call_operand.vmem [shape: f32[1,32], index: 5, kind: input, shape index: {}]   ;;  %s1028_s6 = inlined_call_operand.<no memory space> [shape: f32[1,1], index: 6, kind: input, shape index: {}]   ;;  %s1029_s7 = inlined_call_operand.hbm [shape: f32[2,1,8], index: 7, kind: output, shape index: {}]  }
   0x1   :  { %v12_v0 = vstv %s1028_s6 }
   0x2   :  { %13 = vst [vmem:[#allocation2] sm:$0x1] %v12_v0 }
   0x3   :  { %14 = vsyncpa [#allocation4], 0 }
   0x4   :  { %16 = vsyncpa [#allocation4 + $0x1], 0  ;;  %s871_s26 = smov 0   ;;  %s873_s27 = smov 0  }
   0x5   :  { %s875_s28 = smov 0   ;;  %s877_s29 = smov 0  }
   0x6 LB: > { %s892_s6 = sadd.s32 4294967295, %s821_s29   ;;  %s623_s30 = sadd.s32 4294967294, %s821_s29   ;;  %s821_s29 = sphi %s877_s29, %s1035_s29   ;;  %s817_s28 = sphi %s875_s28, %s1034_s28   ;;  %s813_s27 = sphi %s873_s27, %s1033_s27   ;;  %s809_s26 = sphi %s871_s26, %s1032_s26  }
   0x7   : > { %s896_s8 = sadd.s32 1, %s821_s29   ;;  %s181_s9 = sadd.s32 1, %s817_s28 }
   0x8   : > { %s178_s10 = ssub.s32 %s821_s29, %s896_s8  ;;  %p191_p0 = scmp.ne.s32.totalorder %s817_s28, %s813_s27 }
   0x9   : > { %p179_p1 = scmp.eq.s32.totalorder %s178_s10, 0  ;;  %p192_p2 = scmp.eq.s32.totalorder %s892_s6, 1 }
   0xa   : > { %p197_p3 = scmp.ne.s32.totalorder %s813_s27, %s809_s26  ;;  %p198_p4 = scmp.eq.s32.totalorder %s623_s30, 1 }
   0xb   : > { %s907_s11 = scalar_select %p179_p1, %s817_s28, %s181_s9  }
   0xc   : > { %p909_p5 = por %p192_p2, %p191_p0  ;;  %p913_p6 = por %p198_p4, %p197_p3 }
   0xd   : > { %p626_p7 = scmp.ge.s32.totalorder %s821_s29, 1  ;;  %p241_p8 = scmp.lt.s32.totalorder %s821_s29, 3 }
   0xf   : > { %p242_p9 = pnand %p626_p7, %p241_p8 }
  0x10   : > { %v276_v1 = vld [vmem:[%s1023_s1] sm:$0xff] (!%p242_p9)  ;;  %v277_v2 = vld [vmem:[%s1023_s1 + $0x8] sm:$0xff] (!%p242_p9)  ;;  %v278_v3 = vld [vmem:[%s1023_s1 + $0x10] sm:$0xff] (!%p242_p9)  ;;  %v823_v4 = vmov (!%p242_p9), 0.0|0.0   ;;  %vm824_vm0 = vmmov (!%p242_p9), 0   ;;  %v825_v7 = vmov (!%p242_p9), 0.0   ;;  %v467_v43 = vlaneseq (!%p242_p9) }
  0x11   : > { %245 = sbr.rel (%p242_p9) target bundleno = 748 (0x2ec), region = 48  ;;  %689 = vmatprep.subr.bf16.mxu0 (!%p242_p9), %v823_v4  ;;  %v690_v5 = vpack.c.bf16 (!%p242_p9), %v277_v2, %v276_v1  ;;  %v279_v6 = vld [vmem:[%s1023_s1 + $0x18] sm:$0xff] (!%p242_p9)  ;;  %662 = vmatprep.mubr.msk.f32.mxu0 (!%p242_p9), %vm824_vm0, %v825_v7  ;;  %p271_p10 = scmp.lt.s32.totalorder (!%p242_p9), %s892_s6, 1  ;;  %vm287_vm1 = vcmask (!%p242_p9), 261120   ;;  %v366_v10 = vld [vmem:[%s1025_s3] sm:$0xff] (!%p242_p9)  ;;  %v367_v11 = vld [vmem:[%s1025_s3 + $0x8] sm:$0xff] (!%p242_p9) }
  0x12   : > { %695 = vmatprep.subr.bf16.mxu1 (!%p242_p9), %v823_v4  ;;  %681 = vmatprep.mubr.msk.f32.mxu1 (!%p242_p9), %vm824_vm0, %v825_v7  ;;  %v693_v8 = vpack.c.bf16 (!%p242_p9), %v279_v6, %v278_v3  ;;  %v696_v12 = vpack.c.bf16 (!%p242_p9), %v367_v11, %v366_v10  ;;  %v368_v13 = vld [vmem:[%s1025_s3 + $0x10] sm:$0xff] (!%p242_p9)  ;;  %v369_v14 = vld [vmem:[%s1025_s3 + $0x18] sm:$0xff] (!%p242_p9)  ;;  %v370_v16 = vld [vmem:[%s1025_s3 + $0x20] sm:$0xff] (!%p242_p9)  ;;  %vm381_vm2 = vcmask (!%p242_p9), 523264   ;;  %v826_v32 = vmov (!%p242_p9), 0   ;;  %s269_s19 = sand.u32 (!%p242_p9), 1, %s813_s27  }
  0x13   : > { %691 = vmatpush3.bf16.msra.mxu0 (!%p242_p9), %v690_v5  ;;  %v699_v15 = vpack.c.bf16 (!%p242_p9), %v369_v14, %v368_v13  ;;  %v371_v17 = vld [vmem:[%s1025_s3 + $0x28] sm:$0xff] (!%p242_p9)  ;;  %v372_v19 = vld [vmem:[%s1025_s3 + $0x30] sm:$0xff] (!%p242_p9)  ;;  %v373_v20 = vld [vmem:[%s1025_s3 + $0x38] sm:$0xff] (!%p242_p9)  ;;  %750 = vset.pattern.permute.xlu0 (!%p242_p9), %v826_v32  ;;  %v468_v44 = vshrl.u32 (!%p242_p9), %v467_v43, 7  ;;  %s635_s20 = sshll.u32 (!%p242_p9), %s892_s6, 4  ;;  %s270_s21 = scalar_lea.vmem (!%p242_p9), [#allocation3], %s269_s19 }
  0x14   : > { %692 = vmatprep.subr.bf16.mxu0 (!%p242_p9), %v823_v4  ;;  %697 = vmatpush3.bf16.msra.mxu1 (!%p242_p9), %v696_v12  ;;  %v702_v18 = vpack.c.bf16 (!%p242_p9), %v371_v17, %v370_v16  ;;  %v705_v21 = vpack.c.bf16 (!%p242_p9), %v373_v20, %v372_v19  ;;  %v628_v22 = vld [vmem:[%s1024_s2] ss:$0 sm:$0xff] (!%p242_p9)  ;;  %vm553_vm3 = vcmask (!%p242_p9), 57344   ;;  %s980_s25 = scalar_lea.hbm (!%p242_p9), %s1029_s7, %s635_s20 }
  0x15   : > { %698 = vmatprep.subr.bf16.mxu1 (!%p242_p9), %v823_v4  ;;  %v461_v31 = vld [vmem:[#allocation2] sm:$0x1] (!%p242_p9)  ;;  %v469_v45 = vsub.s32 (!%p242_p9), 0, %v468_v44 }
  0x16   : > { %464 = vperm.xlu0 (!%p242_p9), %750, %v461_v31   ;;  %v630_v33 = vld [vmem:[%s1026_s4] ss:$0 sm:$0xff] (!%p242_p9) }
  0x17   : > { %694 = vmatpush3.bf16.msra.mxu0 (!%p242_p9), %v693_v8  ;;  %v460_v42 = vld [vmem:[%s1027_s5] sm:$0x1] (!%p242_p9) }
  0x18   : > { %s272_s22 = scalar_select %p271_p10, %s892_s6, 1  ;;  %684 = vmatprep.subr.mxu0 %v825_v7  ;;  %700 = vmatpush3.bf16.msra.mxu1 %v699_v15 }
  0x19   : > { %701 = vmatprep.subr.bf16.mxu1 %v823_v4  ;;  %s827_s6 = smov [#allocation3]  }
  0x1a   : > { %s627_s23 = sshll.u32 %s272_s22, 3  ;;  %s568_s22 = sshll.u32 %s270_s21, 4  ;;  %s982_s22 = int_to_ptr.vmem [resolvable:$true] %s568_s22 }
  0x1b   : > { %s274_s30 = scalar_lea.vmem %s1022_s0, %s627_s23  ;;  %s759_s9 = scalar_lea.vmem %s982_s22, 16 }
  0x1c   : > { %v275_v9 = vld [vmem:[%s274_s30] sm:$0xff]  ;;  %703 = vmatpush3.bf16.msra.mxu1 %v702_v18  ;;  %s556_s30 = scalar_lea.sflag [#allocation4], %s269_s19  ;;  %p760_p11 = scmp.ne.s32.totalorder %s982_s22, %s759_s9 }
  0x1d   : > { %663 = vmatmul.mubr.msk.f32.vlgmr.msra.gmra.mrb[0].mxu0 %vm287_vm1, %v275_v9  ;;  %704 = vmatprep.subr.bf16.mxu1 %v823_v4  ;;  %s763_s10 = sshll.u32 %s827_s6, 4  ;;  %s764_s10 = int_to_ptr.vmem [resolvable:$false] %s763_s10 }
  0x1e   : > { %686 = vmatprep.mubr.msk.f32.mxu0 %vm824_vm0, %v825_v7  ;;  %p761_p12 = pnand %p760_p11, %p909_p5  ;;  %s765_s14 = scalar_lea.vmem %s764_s10, 32 }
  0x1f   : > { %p766_p0 = scmp.lt.s32.totalorder %s982_s22, %s764_s10  ;;  %p767_p1 = scmp.lt.s32.totalorder %s765_s14, %s759_s9 }
  0x20   : > { %706 = vmatpush3.bf16.msra.mxu1 %v705_v21  ;;  %p762_p13 = pneg %p761_p12 }
  0x21   : > { %p768_p2 = por %p767_p1, %p766_p0 }
  0x23   : > { %p769_p3 = pnand %p768_p2, %p762_p13 }
  0x95   : > { %v465_v46 = vpop.permute.xlu0 %464 }
  0x96   : > { %v470_v47 = vrot.slane %v465_v46, %v469_v45 }
  0xf0   : > { %v357_v23 = vpop.f32.mrb[0].mxu0 }
  0xf1   : > { %v358_v24 = vadd.f32 %v628_v22, %v357_v23  ;;  %v664_v25 = vpop.f32.mrb[1].mxu0 }
  0xf3   : > { %v362_v26 = vmul.f32 0.70710677, %v358_v24  ;;  %v361_v28 = vmul.f32 0.5, %v358_v24 }
  0xf5   : > { %751 = verf.f32 %v362_v26 }
  0xff   : > { %v752_v27 = vpop.eup %751 }
 0x100   : > { %v364_v29 = vadd.f32 1.0, %v752_v27 }
 0x102   : > { %v365_v30 = vmul.f32 %v364_v29, %v361_v28 }
 0x104   : > { %682 = vmatmul.mubr.msk.f32.vlgmr.msra.gmra.mrb[0].mxu1 %vm381_vm2, %v365_v30 }
 0x1d7   : > { %v451_v34 = vpop.f32.mrb[0].mxu1 }
 0x1d8   : > { %v452_v35 = vadd.f32 %v630_v33, %v451_v34  ;;  %v683_v36 = vpop.f32.mrb[1].mxu1 }
 0x1da   : > { %v456_v37 = vmul.f32 0.70710677, %v452_v35  ;;  %v455_v39 = vmul.f32 0.5, %v452_v35 }
 0x1dc   : > { %753 = verf.f32 %v456_v37 }
 0x1e6   : > { %v754_v38 = vpop.eup %753 }
 0x1e7   : > { %v458_v40 = vadd.f32 1.0, %v754_v38 }
 0x1e9   : > { %v459_v41 = vmul.f32 %v458_v40, %v455_v39 }
 0x1eb   : > { %685 = vmatpush3.xpose.msk.msra.mxu0 %vm287_vm1, %v459_v41 }
 0x1ee   : > { %687 = vmatmul.mubr.msk.f32.vlgmr.msra.gmra.mrb[2].mxu0 %vm287_vm1, %v460_v42 }
 0x2c1   : > { %v543_v48 = vpop.f32.mrb[2].mxu0 }
 0x2c2   : > { %v544_v49 = vadd.f32 %v543_v48, %v470_v47  ;;  %v688_v50 = vpop.f32.mrb[3].mxu0 }
 0x2c4   : > { %v634_v51 = vmul.f32 -1.442695, %v544_v49 }
 0x2c6   : > { %755 = vpow2.f32 %v634_v51 }
 0x2d0   : > { %v756_v52 = vpop.eup %755 }
 0x2d1   : > { %v550_v53 = vadd.f32 1.0, %v756_v52 }
 0x2d3   : > { %757 = vrcp.f32 %v550_v53 }
 0x2dd   : > { %v758_v54 = vpop.eup %757 }
 0x2de   : > { %554 = vst.msk [vmem:[%s270_s21] sm:$0x1] %vm553_vm3, %v758_v54 }
 0x2df   : > { %772 = shalt.err (!%p769_p3)
}
 0x2e0   : > { %s773_s15 = scalar_lea.hbm %s980_s25, 16  ;;  %s777_s18 = scalar_lea.hbm %s1029_s7, 32 }
 0x2e1   : > { %p774_p4 = scmp.ne.s32.totalorder %s980_s25, %s773_s15  ;;  %p778_p9 = scmp.lt.u32.totalorder %s980_s25, %s1029_s7 }
 0x2e2   : > { %p779_p10 = scmp.lt.u32.totalorder %s777_s18, %s773_s15  ;;  %p781_p12 = scmp.lt.u32.totalorder %s773_s15, %s980_s25 }
 0x2e3   : > { %p775_p7 = pnand %p774_p4, %p909_p5 }
 0x2e4   : > { %p780_p11 = por %p779_p10, %p778_p9 }
 0x2e5   : > { %p776_p8 = pneg %p775_p7 }
 0x2e6   : > { %p782_p13 = por %p781_p12, %p780_p11 }
 0x2e8   : > { %p783_p0 = pnand %p782_p13, %p776_p8 }
 0x2ea   : > { %786 = shalt.err (!%p783_p0)
}
 0x2eb   : > { %707 = dma.vmem_to_hbm [thread:$0]  (%p909_p5), %s982_s22, 16, %s980_s25, %s556_s30  }
 0x2ec PF: > { %p713_p1 = scmp.ge.s32.totalorder %s821_s29, 2  ;;  %s580_s21 = sand.u32 1, %s809_s26  }
 0x2ed   : > { %s581_s23 = scalar_lea.sflag [#allocation4], %s580_s21 }
 0x2ee   : > { %p710_p2 = pnand %p713_p1, %p913_p6 }
 0x2f0   : > { %804 = dma.done.wait (!%p710_p2), %s581_s23, 16  }
 0x2f1   : > { %806 = vsyncadd (!%p710_p2), %s581_s23, 4294967280  ;;  %p19_p3 = scmp.ge.s32.totalorder %s896_s8, 4   ;;  %s1032_s26 = smov %s813_s27 }
 0x2f2   : > { %s1033_s27 = smov %s817_s28  ;;  %s1034_s28 = smov %s907_s11 }
 0x2f3   : > { %s1035_s29 = smov %s896_s8  ;;  %21 = sbr.rel (!%p19_p3) target bundleno = 6 (0x6), region = 83 }
 0x2fa   :  { %585 = vsyncpa [#allocation4], 1 }
 0x2fb   :  { %587 = vsyncpa [#allocation4 + $0x1], 1 }

// kernel: tpu_custom_call.1
= control target key start
LH: loop header
LB: loop body
LE: loop exit
PB: predicated region body
PF: predicated region fallthrough
CT: control target
= control target key end

     0   :  { %s1022_s0 = inlined_call_operand.vmem [shape: f32[16,32], index: 0, kind: input, shape index: {}]   ;;  %s1023_s1 = inlined_call_operand.vmem [shape: f32[32,64], index: 1, kind: input, shape index: {}]   ;;  %s1024_s2 = inlined_call_operand.vmem [shape: f32[1,64], index: 2, kind: input, shape index: {}]   ;;  %s1025_s3 = inlined_call_operand.vmem [shape: f32[64,32], index: 3, kind: input, shape index: {}]   ;;  %s1026_s4 = inlined_call_operand.vmem [shape: f32[1,32], index: 4, kind: input, shape index: {}]   ;;  %s1027_s5 = inlined_call_operand.vmem [shape: f32[1,32], index: 5, kind: input, shape index: {}]   ;;  %s1028_s6 = inlined_call_operand.<no memory space> [shape: f32[1,1], index: 6, kind: input, shape index: {}]   ;;  %s1029_s7 = inlined_call_operand.hbm [shape: f32[2,1,8], index: 7, kind: output, shape index: {}]  }
   0x1   :  { %v12_v0 = vstv %s1028_s6 }
   0x2   :  { %13 = vst [vmem:[#allocation2] sm:$0x1] %v12_v0 }
   0x3   :  { %14 = vsyncpa [#allocation4], 0 }
   0x4   :  { %16 = vsyncpa [#allocation4 + $0x1], 0  ;;  %s871_s26 = smov 0   ;;  %s873_s27 = smov 0  }
   0x5   :  { %s875_s28 = smov 0   ;;  %s877_s29 = smov 0  }
   0x6 LB: > { %s892_s6 = sadd.s32 4294967295, %s821_s29   ;;  %s623_s30 = sadd.s32 4294967294, %s821_s29   ;;  %s821_s29 = sphi %s877_s29, %s1035_s29   ;;  %s817_s28 = sphi %s875_s28, %s1034_s28   ;;  %s813_s27 = sphi %s873_s27, %s1033_s27   ;;  %s809_s26 = sphi %s871_s26, %s1032_s26  }
   0x7   : > { %s896_s8 = sadd.s32 1, %s821_s29   ;;  %s181_s9 = sadd.s32 1, %s817_s28 }
   0x8   : > { %s178_s10 = ssub.s32 %s821_s29, %s896_s8  ;;  %p191_p0 = scmp.ne.s32.totalorder %s817_s28, %s813_s27 }
   0x9   : > { %p179_p1 = scmp.eq.s32.totalorder %s178_s10, 0  ;;  %p192_p2 = scmp.eq.s32.totalorder %s892_s6, 1 }
   0xa   : > { %p197_p3 = scmp.ne.s32.totalorder %s813_s27, %s809_s26  ;;  %p198_p4 = scmp.eq.s32.totalorder %s623_s30, 1 }
   0xb   : > { %s907_s11 = scalar_select %p179_p1, %s817_s28, %s181_s9  }
   0xc   : > { %p909_p5 = por %p192_p2, %p191_p0  ;;  %p913_p6 = por %p198_p4, %p197_p3 }
   0xd   : > { %p626_p7 = scmp.ge.s32.totalorder %s821_s29, 1  ;;  %p241_p8 = scmp.lt.s32.totalorder %s821_s29, 3 }
   0xf   : > { %p242_p9 = pnand %p626_p7, %p241_p8 }
  0x10   : > { %v276_v1 = vld [vmem:[%s1023_s1] sm:$0xff] (!%p242_p9)  ;;  %v277_v2 = vld [vmem:[%s1023_s1 + $0x8] sm:$0xff] (!%p242_p9)  ;;  %v278_v3 = vld [vmem:[%s1023_s1 + $0x10] sm:$0xff] (!%p242_p9)  ;;  %v823_v4 = vmov (!%p242_p9), 0.0|0.0   ;;  %vm824_vm0 = vmmov (!%p242_p9), 0   ;;  %v825_v7 = vmov (!%p242_p9), 0.0   ;;  %v467_v43 = vlaneseq (!%p242_p9) }
  0x11   : > { %245 = sbr.rel (%p242_p9) target bundleno = 748 (0x2ec), region = 48  ;;  %689 = vmatprep.subr.bf16.mxu0 (!%p242_p9), %v823_v4  ;;  %v690_v5 = vpack.c.bf16 (!%p242_p9), %v277_v2, %v276_v1  ;;  %v279_v6 = vld [vmem:[%s1023_s1 + $0x18] sm:$0xff] (!%p242_p9)  ;;  %662 = vmatprep.mubr.msk.f32.mxu0 (!%p242_p9), %vm824_vm0, %v825_v7  ;;  %p271_p10 = scmp.lt.s32.totalorder (!%p242_p9), %s892_s6, 1  ;;  %vm287_vm1 = vcmask (!%p242_p9), 261120   ;;  %v366_v10 = vld [vmem:[%s1025_s3] sm:$0xff] (!%p242_p9)  ;;  %v367_v11 = vld [vmem:[%s1025_s3 + $0x8] sm:$0xff] (!%p242_p9) }
  0x12   : > { %695 = vmatprep.subr.bf16.mxu1 (!%p242_p9), %v823_v4  ;;  %681 = vmatprep.mubr.msk.f32.mxu1 (!%p242_p9), %vm824_vm0, %v825_v7  ;;  %v693_v8 = vpack.c.bf16 (!%p242_p9), %v279_v6, %v278_v3  ;;  %v696_v12 = vpack.c.bf16 (!%p242_p9), %v367_v11, %v366_v10  ;;  %v368_v13 = vld [vmem:[%s1025_s3 + $0x10] sm:$0xff] (!%p242_p9)  ;;  %v369_v14 = vld [vmem:[%s1025_s3 + $0x18] sm:$0xff] (!%p242_p9)  ;;  %v370_v16 = vld [vmem:[%s1025_s3 + $0x20] sm:$0xff] (!%p242_p9)  ;;  %vm381_vm2 = vcmask (!%p242_p9), 523264   ;;  %v826_v32 = vmov (!%p242_p9), 0   ;;  %s269_s19 = sand.u32 (!%p242_p9), 1, %s813_s27  }
  0x13   : > { %691 = vmatpush3.bf16.msra.mxu0 (!%p242_p9), %v690_v5  ;;  %v699_v15 = vpack.c.bf16 (!%p242_p9), %v369_v14, %v368_v13  ;;  %v371_v17 = vld [vmem:[%s1025_s3 + $0x28] sm:$0xff] (!%p242_p9)  ;;  %v372_v19 = vld [vmem:[%s1025_s3 + $0x30] sm:$0xff] (!%p242_p9)  ;;  %v373_v20 = vld [vmem:[%s1025_s3 + $0x38] sm:$0xff] (!%p242_p9)  ;;  %750 = vset.pattern.permute.xlu0 (!%p242_p9), %v826_v32  ;;  %v468_v44 = vshrl.u32 (!%p242_p9), %v467_v43, 7  ;;  %s635_s20 = sshll.u32 (!%p242_p9), %s892_s6, 4  ;;  %s270_s21 = scalar_lea.vmem (!%p242_p9), [#allocation3], %s269_s19 }
  0x14   : > { %692 = vmatprep.subr.bf16.mxu0 (!%p242_p9), %v823_v4  ;;  %697 = vmatpush3.bf16.msra.mxu1 (!%p242_p9), %v696_v12  ;;  %v702_v18 = vpack.c.bf16 (!%p242_p9), %v371_v17, %v370_v16  ;;  %v705_v21 = vpack.c.bf16 (!%p242_p9), %v373_v20, %v372_v19  ;;  %v628_v22 = vld [vmem:[%s1024_s2] ss:$0 sm:$0xff] (!%p242_p9)  ;;  %vm553_vm3 = vcmask (!%p242_p9), 57344   ;;  %s980_s25 = scalar_lea.hbm (!%p242_p9), %s1029_s7, %s635_s20 }
  0x15   : > { %698 = vmatprep.subr.bf16.mxu1 (!%p242_p9), %v823_v4  ;;  %v461_v31 = vld [vmem:[#allocation2] sm:$0x1] (!%p242_p9)  ;;  %v469_v45 = vsub.s32 (!%p242_p9), 0, %v468_v44 }
  0x16   : > { %464 = vperm.xlu0 (!%p242_p9), %750, %v461_v31   ;;  %v630_v33 = vld [vmem:[%s1026_s4] ss:$0 sm:$0xff] (!%p242_p9) }
  0x17   : > { %694 = vmatpush3.bf16.msra.mxu0 (!%p242_p9), %v693_v8  ;;  %v460_v42 = vld [vmem:[%s1027_s5] sm:$0x1] (!%p242_p9) }
  0x18   : > { %s272_s22 = scalar_select %p271_p10, %s892_s6, 1  ;;  %684 = vmatprep.subr.mxu0 %v825_v7  ;;  %700 = vmatpush3.bf16.msra.mxu1 %v699_v15 }
  0x19   : > { %701 = vmatprep.subr.bf16.mxu1 %v823_v4  ;;  %s827_s6 = smov [#allocation3]  }
  0x1a   : > { %s627_s23 = sshll.u32 %s272_s22, 3  ;;  %s568_s22 = sshll.u32 %s270_s21, 4  ;;  %s982_s22 = int_to_ptr.vmem [resolvable:$true] %s568_s22 }
  0x1b   : > { %s274_s30 = scalar_lea.vmem %s1022_s0, %s627_s23  ;;  %s759_s9 = scalar_lea.vmem %s982_s22, 16 }
  0x1c   : > { %v275_v9 = vld [vmem:[%s274_s30] sm:$0xff]  ;;  %703 = vmatpush3.bf16.msra.mxu1 %v702_v18  ;;  %s556_s30 = scalar_lea.sflag [#allocation4], %s269_s19  ;;  %p760_p11 = scmp.ne.s32.totalorder %s982_s22, %s759_s9 }
  0x1d   : > { %663 = vmatmul.mubr.msk.f32.vlgmr.msra.gmra.mrb[0].mxu0 %vm287_vm1, %v275_v9  ;;  %704 = vmatprep.subr.bf16.mxu1 %v823_v4  ;;  %s763_s10 = sshll.u32 %s827_s6, 4  ;;  %s764_s10 = int_to_ptr.vmem [resolvable:$false] %s763_s10 }
  0x1e   : > { %686 = vmatprep.mubr.msk.f32.mxu0 %vm824_vm0, %v825_v7  ;;  %p761_p12 = pnand %p760_p11, %p909_p5  ;;  %s765_s14 = scalar_lea.vmem %s764_s10, 32 }
  0x1f   : > { %p766_p0 = scmp.lt.s32.totalorder %s982_s22, %s764_s10  ;;  %p767_p1 = scmp.lt.s32.totalorder %s765_s14, %s759_s9 }
  0x20   : > { %706 = vmatpush3.bf16.msra.mxu1 %v705_v21  ;;  %p762_p13 = pneg %p761_p12 }
  0x21   : > { %p768_p2 = por %p767_p1, %p766_p0 }
  0x23   : > { %p769_p3 = pnand %p768_p2, %p762_p13 }
  0x95   : > { %v465_v46 = vpop.permute.xlu0 %464 }
  0x96   : > { %v470_v47 = vrot.slane %v465_v46, %v469_v45 }
  0xf0   : > { %v357_v23 = vpop.f32.mrb[0].mxu0 }
  0xf1   : > { %v358_v24 = vadd.f32 %v628_v22, %v357_v23  ;;  %v664_v25 = vpop.f32.mrb[1].mxu0 }
  0xf3   : > { %v362_v26 = vmul.f32 0.70710677, %v358_v24  ;;  %v361_v28 = vmul.f32 0.5, %v358_v24 }
  0xf5   : > { %751 = verf.f32 %v362_v26 }
  0xff   : > { %v752_v27 = vpop.eup %751 }
 0x100   : > { %v364_v29 = vadd.f32 1.0, %v752_v27 }
 0x102   : > { %v365_v30 = vmul.f32 %v364_v29, %v361_v28 }
 0x104   : > { %682 = vmatmul.mubr.msk.f32.vlgmr.msra.gmra.mrb[0].mxu1 %vm381_vm2, %v365_v30 }
 0x1d7   : > { %v451_v34 = vpop.f32.mrb[0].mxu1 }
 0x1d8   : > { %v452_v35 = vadd.f32 %v630_v33, %v451_v34  ;;  %v683_v36 = vpop.f32.mrb[1].mxu1 }
 0x1da   : > { %v456_v37 = vmul.f32 0.70710677, %v452_v35  ;;  %v455_v39 = vmul.f32 0.5, %v452_v35 }
 0x1dc   : > { %753 = verf.f32 %v456_v37 }
 0x1e6   : > { %v754_v38 = vpop.eup %753 }
 0x1e7   : > { %v458_v40 = vadd.f32 1.0, %v754_v38 }
 0x1e9   : > { %v459_v41 = vmul.f32 %v458_v40, %v455_v39 }
 0x1eb   : > { %685 = vmatpush3.xpose.msk.msra.mxu0 %vm287_vm1, %v459_v41 }
 0x1ee   : > { %687 = vmatmul.mubr.msk.f32.vlgmr.msra.gmra.mrb[2].mxu0 %vm287_vm1, %v460_v42 }
 0x2c1   : > { %v543_v48 = vpop.f32.mrb[2].mxu0 }
 0x2c2   : > { %v544_v49 = vadd.f32 %v543_v48, %v470_v47  ;;  %v688_v50 = vpop.f32.mrb[3].mxu0 }
 0x2c4   : > { %v634_v51 = vmul.f32 -1.442695, %v544_v49 }
 0x2c6   : > { %755 = vpow2.f32 %v634_v51 }
 0x2d0   : > { %v756_v52 = vpop.eup %755 }
 0x2d1   : > { %v550_v53 = vadd.f32 1.0, %v756_v52 }
 0x2d3   : > { %757 = vrcp.f32 %v550_v53 }
 0x2dd   : > { %v758_v54 = vpop.eup %757 }
 0x2de   : > { %554 = vst.msk [vmem:[%s270_s21] sm:$0x1] %vm553_vm3, %v758_v54 }
 0x2df   : > { %772 = shalt.err (!%p769_p3)
}
 0x2e0   : > { %s773_s15 = scalar_lea.hbm %s980_s25, 16  ;;  %s777_s18 = scalar_lea.hbm %s1029_s7, 32 }
 0x2e1   : > { %p774_p4 = scmp.ne.s32.totalorder %s980_s25, %s773_s15  ;;  %p778_p9 = scmp.lt.u32.totalorder %s980_s25, %s1029_s7 }
 0x2e2   : > { %p779_p10 = scmp.lt.u32.totalorder %s777_s18, %s773_s15  ;;  %p781_p12 = scmp.lt.u32.totalorder %s773_s15, %s980_s25 }
 0x2e3   : > { %p775_p7 = pnand %p774_p4, %p909_p5 }
 0x2e4   : > { %p780_p11 = por %p779_p10, %p778_p9 }
 0x2e5   : > { %p776_p8 = pneg %p775_p7 }
 0x2e6   : > { %p782_p13 = por %p781_p12, %p780_p11 }
 0x2e8   : > { %p783_p0 = pnand %p782_p13, %p776_p8 }
 0x2ea   : > { %786 = shalt.err (!%p783_p0)
}
 0x2eb   : > { %707 = dma.vmem_to_hbm [thread:$0]  (%p909_p5), %s982_s22, 16, %s980_s25, %s556_s30  }
 0x2ec PF: > { %p713_p1 = scmp.ge.s32.totalorder %s821_s29, 2  ;;  %s580_s21 = sand.u32 1, %s809_s26  }
 0x2ed   : > { %s581_s23 = scalar_lea.sflag [#allocation4], %s580_s21 }
 0x2ee   : > { %p710_p2 = pnand %p713_p1, %p913_p6 }
 0x2f0   : > { %804 = dma.done.wait (!%p710_p2), %s581_s23, 16  }
 0x2f1   : > { %806 = vsyncadd (!%p710_p2), %s581_s23, 4294967280  ;;  %p19_p3 = scmp.ge.s32.totalorder %s896_s8, 4   ;;  %s1032_s26 = smov %s813_s27 }
 0x2f2   : > { %s1033_s27 = smov %s817_s28  ;;  %s1034_s28 = smov %s907_s11 }
 0x2f3   : > { %s1035_s29 = smov %s896_s8  ;;  %21 = sbr.rel (!%p19_p3) target bundleno = 6 (0x6), region = 83 }
 0x2fa   :  { %585 = vsyncpa [#allocation4], 1 }
 0x2fb   :  { %587 = vsyncpa [#allocation4 + $0x1], 1 }

</bundles_post_ra>
